<compile_context>
chip_gen: v7x
topology: tpu7x:2x2x1
jax: 0.10.0
libtpu: 0.0.40
codegen_flags: <defaults>
</compile_context>

<pallas_src>
import numpy as np
import jax
import jax.numpy as jnp
from jax.experimental import pallas as pl
from jax.experimental.pallas import tpu as pltpu


# ---------------- deterministic parameter construction (no file loads) -------

def _hz_to_mel(f):
    f = np.asarray(f, dtype=np.float64)
    f_sp = 200.0 / 3
    mels = f / f_sp
    min_log_hz = 1000.0
    min_log_mel = min_log_hz / f_sp
    logstep = np.log(6.4) / 27.0
    if mels.ndim:
        log_t = f >= min_log_hz
        mels[log_t] = min_log_mel + np.log(f[log_t] / min_log_hz) / logstep
    elif f >= min_log_hz:
        mels = min_log_mel + np.log(f / min_log_hz) / logstep
    return mels


def _mel_to_hz(m):
    m = np.asarray(m, dtype=np.float64)
    f_sp = 200.0 / 3
    freqs = f_sp * m
    min_log_hz = 1000.0
    min_log_mel = min_log_hz / f_sp
    logstep = np.log(6.4) / 27.0
    log_t = m >= min_log_mel
    freqs[log_t] = min_log_hz * np.exp(logstep * (m[log_t] - min_log_mel))
    return freqs


def mel_filterbank(sample_rate, n_fft, n_mels):
    """Equivalent of librosa.filters.mel (Slaney mel scale + Slaney area norm)."""
    fmin, fmax = 0.0, sample_rate / 2.0
    n_freqs = n_fft // 2 + 1
    fftfreqs = np.linspace(0.0, sample_rate / 2.0, n_freqs)
    mel_pts = np.linspace(_hz_to_mel(fmin), _hz_to_mel(fmax), n_mels + 2)
    hz_pts = _mel_to_hz(mel_pts)
    fdiff = np.diff(hz_pts)
    ramps = hz_pts[:, None] - fftfreqs[None, :]
    weights = np.zeros((n_mels, n_freqs), dtype=np.float64)
    for i in range(n_mels):
        lower = -ramps[i] / fdiff[i]
        upper = ramps[i + 2] / fdiff[i + 1]
        weights[i] = np.maximum(0.0, np.minimum(lower, upper))
    enorm = 2.0 / (hz_pts[2:n_mels + 2] - hz_pts[:n_mels])
    weights *= enorm[:, None]
    return weights.astype(np.float32)                      # (n_mels, n_fft//2+1)


def fourier_basis(filter_length):
    """Real/imag rows of the DFT matrix (torch-stft 'forward_basis')."""
    fb = np.fft.fft(np.eye(filter_length))
    cutoff = filter_length // 2 + 1
    real = np.real(fb[:cutoff]).astype(np.float32)          # (cutoff, filter_length)
    imag = np.imag(fb[:cutoff]).astype(np.float32)
    return real, imag


# ---------------------------- Pallas kernels ----------------------------------

_DB_SCALE = 10.0 / float(np.log(10.0))
_VMEM_LIMIT = 32 * 1024 * 1024          # safe on v5e/v6e (128 MiB) and v7x (64 MiB)
_AUDIO_ROW_CAP = 4 * 1024 * 1024        # per-batch resident audio row cap (bytes)


def _make_audio_kernel(r, tt, win, cp):
    """Kernel that builds its (tt, K) frame LHS in-VMEM from the audio row."""

    def kernel(audio_ref, basis_ref, mel_t_ref, out_ref):
        # audio_ref: (1, R_pad, hop)  whole padded row of this batch element
        # basis_ref: (r, hop, 2*cp)   per-hop-chunk (real | imag) DFT basis
        # mel_t_ref: (cp, NMp)        transposed mel filterbank (DC/Nyquist dropped)
        # out_ref:   (1, tt, NMp)
        j = pl.program_id(1)
        row0 = pl.multiple_of(j * tt, 8)                 # aligned window start
        w = audio_ref[0, pl.ds(row0, win), :]            # (tt + extra, hop)
        ri = jnp.zeros((tt, 2 * cp), dtype=jnp.float32)
        for i in range(r):                               # r = K // hop shifted slabs
            piece = w[i:i + tt, :]                       # frame chunk i: (tt, hop)
            ri = ri + jnp.dot(piece, basis_ref[i],
                              preferred_element_type=jnp.float32)
        real = ri[:, :cp]
        imag = ri[:, cp:]
        mag = jnp.sqrt(real * real + imag * imag)        # STFT magnitude, lane-dense
        mel = jnp.dot(mag, mel_t_ref[...], preferred_element_type=jnp.float32)
        out_ref[0] = _DB_SCALE * jnp.log(mel * mel + 1e-8)

    return kernel


def _mel_frames_kernel(frames_ref, basis_ref, mel_t_ref, out_ref):
    """Fallback kernel operating on pre-framed (tm, K) rows."""
    cp = mel_t_ref.shape[0]
    ri = jnp.dot(frames_ref[...], basis_ref[...], preferred_element_type=jnp.float32)
    real = ri[:, :cp]
    imag = ri[:, cp:]
    mag = jnp.sqrt(real * real + imag * imag)
    mel = jnp.dot(mag, mel_t_ref[...], preferred_element_type=jnp.float32)
    out_ref[...] = _DB_SCALE * jnp.log(mel * mel + 1e-8)


# ------------------------------- wrapper ---------------------------------------

def _mel_spectrogram(audio, basis_kr, mel_t, K, hop, num_mels, CP, NMp, tt_target):
    B, S = audio.shape
    pad = K // 2
    x = jnp.pad(audio.astype(jnp.float32), ((0, 0), (pad, pad)))
    L = S + 2 * pad
    T = (L - K) // hop + 1                               # frames per batch element

    # ---- primary path: in-kernel framing from a (B, rows, hop) audio slab ----
    if K % hop == 0:
        r = K // hop
        T8 = pl.cdiv(T, 8) * 8
        tt = min(tt_target, T8)                          # frames per grid step (x8)
        nT = pl.cdiv(T, tt)
        T_pad = nT * tt
        extra = pl.cdiv(r - 1, 8) * 8                    # aligned window slack
        win = tt + extra
        R_pad = T_pad + extra
        if R_pad * hop * 4 <= _AUDIO_ROW_CAP:
            target_len = R_pad * hop
            if target_len > L:
                x2 = jnp.pad(x, ((0, 0), (0, target_len - L)))
            else:
                x2 = x[:, :target_len]
            audio3 = x2.reshape(B, R_pad, hop)
            basis3 = basis_kr.reshape(r, hop, 2 * CP)

            out = pl.pallas_call(
                _make_audio_kernel(r, tt, win, CP),
                out_shape=jax.ShapeDtypeStruct((B, T_pad, NMp), jnp.float32),
                grid_spec=pltpu.PrefetchScalarGridSpec(
                    num_scalar_prefetch=0,
                    grid=(B, nT),
                    in_specs=[
                        # whole row per batch element; re-DMA'd only when b changes
                        pl.BlockSpec((1, R_pad, hop), lambda b, j: (b, 0, 0)),
                        pl.BlockSpec((r, hop, 2 * CP), lambda b, j: (0, 0, 0)),
                        pl.BlockSpec((CP, NMp), lambda b, j: (0, 0)),
                    ],
                    out_specs=pl.BlockSpec((1, tt, NMp), lambda b, j: (b, j, 0)),
                ),
                compiler_params=pltpu.CompilerParams(
                    dimension_semantics=("parallel", "parallel"),
                    vmem_limit_bytes=_VMEM_LIMIT),
            )(audio3, basis3, mel_t)
            return out[:, :T, :num_mels]

    # ---- fallback: materialize (M, K) frames (K % hop != 0 or huge rows) ----
    if K % hop == 0:
        rr = K // hop
        slabs = [x[:, i * hop: i * hop + T * hop].reshape(B, T, hop)
                 for i in range(rr)]
        frames = jnp.concatenate(slabs, axis=-1).reshape(B * T, K)
    else:
        idx = jnp.arange(T)[:, None] * hop + jnp.arange(K)[None, :]
        frames = x[:, idx].reshape(B * T, K)
    M = B * T
    tm = tt_target * 2
    if M <= tm:
        tm = max(8, pl.cdiv(M, 8) * 8)                   # short clip: pad rows to 8
    M_pad = pl.cdiv(M, tm) * tm
    frames = jnp.pad(frames, ((0, M_pad - M), (0, 0)))

    out = pl.pallas_call(
        _mel_frames_kernel,
        out_shape=jax.ShapeDtypeStruct((M_pad, NMp), jnp.float32),
        grid_spec=pltpu.PrefetchScalarGridSpec(
            num_scalar_prefetch=0,
            grid=(M_pad // tm,),
            in_specs=[
                pl.BlockSpec((tm, K), lambda i: (i, 0)),
                pl.BlockSpec((K, 2 * CP), lambda i: (0, 0)),
                pl.BlockSpec((CP, NMp), lambda i: (0, 0)),
            ],
            out_specs=pl.BlockSpec((tm, NMp), lambda i: (i, 0)),
        ),
        compiler_params=pltpu.CompilerParams(
            dimension_semantics=("parallel",),
            vmem_limit_bytes=_VMEM_LIMIT),
    )(frames, basis_kr, mel_t)
    return out[:M, :num_mels].reshape(B, T, num_mels)


def make_mel_spectrogram(sample_rate=44100, filter_length=1024, hop_length=512,
                         num_mels=150, frames_per_tile=512):
    """Pack DFT/mel constants once and return a jitted audio->mel-dB callable.

    frames_per_tile=512 is safe on all generations; 1024-2048 (with a higher
    vmem_limit_bytes) gains a few percent for long audio on v5e/v6e.
    """
    K, hop = filter_length, hop_length
    cutoff = K // 2 + 1
    basis_real, basis_imag = fourier_basis(K)
    mel_fb = mel_filterbank(sample_rate, K, num_mels)

    # Dropping the DC/Nyquist bins is exact only because the Slaney filterbank
    # with fmin=0, fmax=sr/2 has (numerically) zero weight in those columns.
    assert np.allclose(mel_fb[:, 0], 0.0, atol=1e-6), "DC mel column not zero"
    assert np.allclose(mel_fb[:, -1], 0.0, atol=1e-6), "Nyquist mel column not zero"

    nbins = cutoff - 2                                    # kept frequency bins
    CP = max(128, pl.cdiv(nbins, 128) * 128)              # e.g. 127 -> 128
    NMp = max(128, pl.cdiv(num_mels, 128) * 128)          # e.g. 80  -> 128

    # Fused (real | imag) transposed DFT basis without DC/Nyquist, zero-padded.
    basis_kr = np.zeros((K, 2 * CP), dtype=np.float32)
    basis_kr[:, :nbins] = basis_real[1:cutoff - 1].T
    basis_kr[:, CP:CP + nbins] = basis_imag[1:cutoff - 1].T

    # Transposed mel filterbank without DC/Nyquist rows, zero-padded.
    mel_t = np.zeros((CP, NMp), dtype=np.float32)
    mel_t[:nbins, :num_mels] = mel_fb[:, 1:cutoff - 1].T

    basis_dev = jnp.asarray(basis_kr)
    mel_t_dev = jnp.asarray(mel_t)

    def fwd(audio):
        return _mel_spectrogram(audio, basis_dev, mel_t_dev, K, hop,
                                num_mels, CP, NMp, frames_per_tile)

    return jax.jit(fwd)


# ------------------------------------ main -------------------------------------

if __name__ == "__main__":
    # Small, module-consistent shapes.
    sample_rate = 16000
    filter_length = 256
    hop_length = 128
    num_mels = 80
    B, S = 2, 2048

    key = jax.random.PRNGKey(0)
    audio = jax.random.normal(key, (B, S), dtype=jnp.float32)

    mel_fn = make_mel_spectrogram(sample_rate, filter_length, hop_length, num_mels)
    out = jax.block_until_ready(mel_fn(audio))

    # Pure-JAX reference (same math as the torch forward pass, full basis/fb).
    basis_real, basis_imag = fourier_basis(filter_length)
    mel_fb = mel_filterbank(sample_rate, filter_length, num_mels)
    pad = filter_length // 2
    x = jnp.pad(audio, ((0, 0), (pad, pad)))
    T = (S + 2 * pad - filter_length) // hop_length + 1
    idx = jnp.arange(T)[:, None] * hop_length + jnp.arange(filter_length)[None, :]
    frames = x[:, idx]
    real = frames @ basis_real.T
    imag = frames @ basis_imag.T
    mag = jnp.sqrt(real ** 2 + imag ** 2)
    mel = mag @ mel_fb.T
    ref = 10.0 * jnp.log(mel ** 2 + 1e-8) / np.log(10.0)

    assert out.shape == (B, T, num_mels), out.shape
    if not np.allclose(np.asarray(out), np.asarray(ref), rtol=1e-3, atol=1e-3):
        raise SystemExit("kernel/reference mismatch")
    print("KERNEL_OK")
</pallas_src>

<mosaic_0001>
module attributes {stable_mosaic.version = 11 : i64} {
  func.func @kernel(%arg0: i32, %arg1: i32, %arg2: memref<1x32x128xf32, #tpu.memory_space<vmem>>, %arg3: memref<2x128x256xf32, #tpu.memory_space<vmem>>, %arg4: memref<128x128xf32, #tpu.memory_space<vmem>>, %arg5: memref<1x24x128xf32, #tpu.memory_space<vmem>>) attributes {dimension_semantics = [#tpu.dimension_semantics<parallel>, #tpu.dimension_semantics<parallel>], iteration_bounds = array<i64: 2, 1>, scalar_prefetch = 0 : i64, scratch_operands = 0 : i64, tpu.core_type = #tpu.core_type<tc>, window_params = [{transform_indices = @transform_0, window_bounds = array<i64: 1, 32, 128>}, {pipeline_mode = #tpu.pipeline_mode<synchronous>, transform_indices = @transform_1, window_bounds = array<i64: 2, 128, 256>}, {pipeline_mode = #tpu.pipeline_mode<synchronous>, transform_indices = @transform_2, window_bounds = array<i64: 128, 128>}, {transform_indices = @transform_3, window_bounds = array<i64: 1, 24, 128>}]} {
    %c24_i32 = arith.constant 24 : i32
    %0 = arith.muli %arg1, %c24_i32 : i32
    %1 = tpu.assume_multiple %0, 8 : i32
    %c0 = arith.constant 0 : index
    %2 = arith.index_cast %1 : i32 to index
    %c0_0 = arith.constant 0 : index
    %3 = vector.load %arg2[%c0, %2, %c0_0] : memref<1x32x128xf32, #tpu.memory_space<vmem>>, vector<1x32x128xf32>
    %4 = vector.shape_cast %3 : vector<1x32x128xf32> to vector<32x128xf32>
    %cst = arith.constant 0.000000e+00 : f32
    %5 = vector.broadcast %cst : f32 to vector<24x256xf32>
    %6 = vector.extract_strided_slice %4 {offsets = [0, 0], sizes = [24, 128], strides = [1, 1]} : vector<32x128xf32> to vector<24x128xf32>
    %c0_1 = arith.constant 0 : index
    %c0_2 = arith.constant 0 : index
    %c0_3 = arith.constant 0 : index
    %7 = vector.load %arg3[%c0_1, %c0_2, %c0_3] : memref<2x128x256xf32, #tpu.memory_space<vmem>>, vector<1x128x256xf32>
    %8 = vector.shape_cast %7 : vector<1x128x256xf32> to vector<128x256xf32>
    %cst_4 = arith.constant dense<0.000000e+00> : vector<24x256xf32>
    %9 = tpu.matmul %6, %8, %cst_4 {dimension_numbers = #tpu.dot_dimension_numbers<[1], [0], [0], [1], [0, 0, 1, 1], [], []>} : vector<24x128xf32>, vector<128x256xf32>, vector<24x256xf32> -> vector<24x256xf32>
    %10 = arith.addf %5, %9 : vector<24x256xf32>
    %11 = vector.extract_strided_slice %4 {offsets = [1, 0], sizes = [24, 128], strides = [1, 1]} : vector<32x128xf32> to vector<24x128xf32>
    %c1 = arith.constant 1 : index
    %c0_5 = arith.constant 0 : index
    %c0_6 = arith.constant 0 : index
    %12 = vector.load %arg3[%c1, %c0_5, %c0_6] : memref<2x128x256xf32, #tpu.memory_space<vmem>>, vector<1x128x256xf32>
    %13 = vector.shape_cast %12 : vector<1x128x256xf32> to vector<128x256xf32>
    %cst_7 = arith.constant dense<0.000000e+00> : vector<24x256xf32>
    %14 = tpu.matmul %11, %13, %cst_7 {dimension_numbers = #tpu.dot_dimension_numbers<[1], [0], [0], [1], [0, 0, 1, 1], [], []>} : vector<24x128xf32>, vector<128x256xf32>, vector<24x256xf32> -> vector<24x256xf32>
    %15 = arith.addf %10, %14 : vector<24x256xf32>
    %16 = vector.extract_strided_slice %15 {offsets = [0, 0], sizes = [24, 128], strides = [1, 1]} : vector<24x256xf32> to vector<24x128xf32>
    %17 = vector.extract_strided_slice %15 {offsets = [0, 128], sizes = [24, 128], strides = [1, 1]} : vector<24x256xf32> to vector<24x128xf32>
    %18 = arith.mulf %16, %16 : vector<24x128xf32>
    %19 = arith.mulf %17, %17 : vector<24x128xf32>
    %20 = arith.addf %18, %19 : vector<24x128xf32>
    %21 = math.sqrt %20 : vector<24x128xf32>
    %c0_8 = arith.constant 0 : index
    %c0_9 = arith.constant 0 : index
    %22 = vector.load %arg4[%c0_8, %c0_9] : memref<128x128xf32, #tpu.memory_space<vmem>>, vector<128x128xf32>
    %cst_10 = arith.constant dense<0.000000e+00> : vector<24x128xf32>
    %23 = tpu.matmul %21, %22, %cst_10 {dimension_numbers = #tpu.dot_dimension_numbers<[1], [0], [0], [1], [0, 0, 1, 1], [], []>} : vector<24x128xf32>, vector<128x128xf32>, vector<24x128xf32> -> vector<24x128xf32>
    %24 = arith.mulf %23, %23 : vector<24x128xf32>
    %cst_11 = arith.constant 9.99999993E-9 : f32
    %25 = vector.broadcast %cst_11 : f32 to vector<24x128xf32>
    %26 = arith.addf %24, %25 : vector<24x128xf32>
    %27 = math.log %26 : vector<24x128xf32>
    %cst_12 = arith.constant 4.34294462 : f32
    %28 = vector.broadcast %cst_12 : f32 to vector<24x128xf32>
    %29 = arith.mulf %28, %27 : vector<24x128xf32>
    %c0_13 = arith.constant 0 : index
    %c0_14 = arith.constant 0 : index
    %c0_15 = arith.constant 0 : index
    %30 = vector.load %arg5[%c0_13, %c0_14, %c0_15] : memref<1x24x128xf32, #tpu.memory_space<vmem>>, vector<1x24x128xf32>
    %31 = vector.shape_cast %30 : vector<1x24x128xf32> to vector<24x128xf32>
    %32 = vector.shape_cast %29 : vector<24x128xf32> to vector<1x24x128xf32>
    tpu.vector_store %arg5[%c0_13, %c0_14, %c0_15], %32 {strides = array<i32>} : memref<1x24x128xf32, #tpu.memory_space<vmem>>, vector<1x24x128xf32>,
    return
  }
  func.func @transform_0(%arg0: i32, %arg1: i32) -> (i32, i32, i32) {
    %c0_i32 = arith.constant 0 : i32
    %c0_i32_0 = arith.constant 0 : i32
    %c0_i32_1 = arith.constant 0 : i32
    return %arg0, %c0_i32, %c0_i32_0 : i32, i32, i32
  }
  func.func @transform_1(%arg0: i32, %arg1: i32) -> (i32, i32, i32) {
    %c0_i32 = arith.constant 0 : i32
    %c0_i32_0 = arith.constant 0 : i32
    %c0_i32_1 = arith.constant 0 : i32
    %c0_i32_2 = arith.constant 0 : i32
    return %c0_i32, %c0_i32_0, %c0_i32_1 : i32, i32, i32
  }
  func.func @transform_2(%arg0: i32, %arg1: i32) -> (i32, i32) {
    %c0_i32 = arith.constant 0 : i32
    %c0_i32_0 = arith.constant 0 : i32
    %c0_i32_1 = arith.constant 0 : i32
    return %c0_i32, %c0_i32_0 : i32, i32
  }
  func.func @transform_3(%arg0: i32, %arg1: i32) -> (i32, i32, i32) {
    %c0_i32 = arith.constant 0 : i32
    %c0_i32_0 = arith.constant 0 : i32
    return %arg0, %arg1, %c0_i32 : i32, i32, i32
  }
}

</mosaic_0001>

<bundles_post_ra>
// kernel: fwd.1
= control target key start
LH: loop header
LB: loop body
LE: loop exit
PB: predicated region body
PF: predicated region fallthrough
CT: control target
= control target key end

     0   :  { %8 = vsyncpa [#allocation3], 0  ;;  %s1002_s12 = smov 0   ;;  %s1004_s13 = smov 0   ;;  %s1171_s0 = inlined_call_operand.vmem [shape: f32[2,32,128], index: 0, kind: input, shape index: {}]   ;;  %s1172_s1 = inlined_call_operand.hbm [shape: f32[2,128,256], index: 1, kind: input, shape index: {}]   ;;  %s1173_s2 = inlined_call_operand.vmem [shape: f32[128,128], index: 2, kind: input, shape index: {}]   ;;  %s1174_s3 = inlined_call_operand.vmem [shape: f32[2,24,128], index: 3, kind: output, shape index: {}]  }
   0x1   :  { %s1006_s14 = smov 0  }
   0x2 LB: > { %s700_s15 = sadd.s32 4294967295, %s974_s14   ;;  %s26_s16 = sadd.s32 1, %s970_s13  ;;  %s974_s14 = sphi %s1006_s14, %s14_s14   ;;  %s970_s13 = sphi %s1004_s13, %s1184_s13   ;;  %s966_s12 = sphi %s1002_s12, %s1183_s12  }
   0x3   : > { %p28_p0 = scmp.ge.s32.totalorder %s26_s16, 2  ;;  %p702_p1 = scmp.ge.s32.totalorder %s974_s14, 1 }
   0x4   : > { %p127_p2 = scmp.lt.s32.totalorder %s974_s14, 3  ;;  %p1027_p4 = scmp.eq.s32.totalorder %s700_s15, 0 }
   0x5   : > { %s1186_s16 = smov (%p28_p0, %s26_s16), 0  ;;  %s976_s19 = smov [#allocation2]  }
   0x6   : > { %p1023_p3 = pnand %p702_p1, %p127_p2  ;;  %s139_s20 = sshll.u32 %s976_s19, 4  ;;  %s140_s20 = int_to_ptr.vmem [resolvable:$true] %s139_s20 }
   0x7   : > { %s1179_s18 = scalar_select %p1027_p4, 1, 0 }
   0x8   : > { %s1178_s17 = scalar_select %p1023_p3, 1, 0 }
   0x9   : > { %p872_p5 = pneg %p1023_p3  ;;  %s920_s24 = scalar_lea.hbm %s1172_s1, 8192 }
   0xa   : > { %p921_p7 = scmp.ne.s32.totalorder %s1172_s1, %s920_s24  ;;  %p927_p11 = scmp.lt.u32.totalorder %s920_s24, %s1172_s1 }
   0xb   : > { %p1035_p6 = pnand %p1027_p4, %p872_p5 }
   0xd   : > { %p922_p8 = pneg %p1035_p6 }
   0xf   : > { %p923_p9 = pnand %p922_p8, %p921_p7 }
  0x11   : > { %p924_p10 = pneg %p923_p9 }
  0x13   : > { %p929_p12 = pnand %p927_p11, %p924_p10 }
  0x15   : > { %932 = shalt.err (!%p929_p12)
}
  0x16   : > { %s933_s29 = scalar_lea.vmem %s140_s20, 8192  ;;  %p941_p2 = scmp.lt.s32.totalorder %s140_s20, %s140_s20 }
  0x17   : > { %p934_p13 = scmp.ne.s32.totalorder %s140_s20, %s933_s29  ;;  %p942_p5 = scmp.lt.s32.totalorder %s933_s29, %s933_s29 }
  0x19   : > { %p936_p0 = pnand %p934_p13, %p922_p8  ;;  %p943_p4 = por %p942_p5, %p941_p2 }
  0x1b   : > { %p937_p1 = pneg %p936_p0 }
  0x1d   : > { %p944_p3 = pnand %p943_p4, %p937_p1 }
  0x1f   : > { %947 = shalt.err (!%p944_p3)
}
  0x20   : > { %s977_s30 = smov 256   ;;  %s978_s4 = smov 16  }
  0x21   : > { %875 = dma.hbm_to_vmem [thread:$0]  (!%p1035_p6), %s1172_s1, 8192, %s140_s20, [#allocation3], %s977_s30, %s977_s30, %s978_s4  }
  0x22   : > { %p1181_p7 = scmp.ne.s32.totalorder %s1178_s17, 0 }
  0x23   : > { %p1182_p9 = scmp.ne.s32.totalorder (!%p1181_p7), %s1179_s18, 0 }
  0x24   : > { %166 = sbr.rel (%p1181_p7) target bundleno = 583 (0x247), region = 32 }
  0x2b   : > { %961 = dma.done.wait (%p1182_p9), [#allocation3], 8192  }
  0x2c   : > { %963 = vsyncadd (%p1182_p9), [#allocation3], 4294959104  ;;  %v979_v0 = vmov 0.0   ;;  %v980_v1 = vmov 0.0|0.0   ;;  %v249_v2 = vld [vmem:[#allocation2 + $0x108] sm:$0xff]  ;;  %v251_v3 = vld [vmem:[#allocation2 + $0x118] sm:$0xff] }
  0x2d   : > { %359 = vmatprep.mubr.f32.mxu0 %v979_v0  ;;  %837 = vmatprep.subr.bf16.mxu1 %v980_v1  ;;  %v248_v4 = vld [vmem:[#allocation2 + $0x100] sm:$0xff]  ;;  %v773_v5 = vpack.c.bf16 %v251_v3, %v249_v2  ;;  %v250_v6 = vld [vmem:[#allocation2 + $0x110] sm:$0xff]  ;;  %v253_v7 = vld [vmem:[#allocation2 + $0x128] sm:$0xff]  ;;  %p194_p3 = scmp.lt.s32.totalorder %s966_s12, 1  ;;  %vm284_vm0 = vcmask 1046528   ;;  %vm981_vm1 = vmmov 0  }
  0x2e   : > { %v255_v8 = vld [vmem:[#allocation2 + $0x138] sm:$0xff]  ;;  %v775_v9 = vpack.c.bf16 %v250_v6, %v248_v4  ;;  %v252_v11 = vld [vmem:[#allocation2 + $0x120] sm:$0xff]  ;;  %v254_v12 = vld [vmem:[#allocation2 + $0x130] sm:$0xff]  ;;  %764 = vmatprep.mubr.msk.f32.mxu1 %vm981_vm1, %v979_v0 }
  0x2f   : > { %v777_v10 = vpack.c.bf16 %v255_v8, %v253_v7  ;;  %v257_v13 = vld [vmem:[#allocation2 + $0x148] sm:$0xff]  ;;  %774 = vmatprep.subr.bf16.mxu0 %v773_v5  ;;  %v259_v14 = vld [vmem:[#allocation2 + $0x158] sm:$0xff]  ;;  %v779_v15 = vpack.c.bf16 %v254_v12, %v252_v11  ;;  %v256_v17 = vld [vmem:[#allocation2 + $0x140] sm:$0xff]  ;;  %s1188_s12 = smov (!%p194_p3, %s966_s12), 1 }
  0x30   : > { %776 = vmatpush1.bf16.msra.mxu0 %v775_v9  ;;  %v781_v16 = vpack.c.bf16 %v259_v14, %v257_v13  ;;  %v258_v18 = vld [vmem:[#allocation2 + $0x150] sm:$0xff]  ;;  %v261_v19 = vld [vmem:[#allocation2 + $0x168] sm:$0xff]  ;;  %v263_v20 = vld [vmem:[#allocation2 + $0x178] sm:$0xff]  ;;  %s712_s7 = sshll.u32 %s1188_s12, 5  ;;  %s867_s24 = smul.u32 24, %s1188_s12 }
  0x31   : > { %778 = vmatprep.subr.bf16.mxu0 %v777_v10  ;;  %v783_v21 = vpack.c.bf16 %v258_v18, %v256_v17  ;;  %v785_v22 = vpack.c.bf16 %v263_v20, %v261_v19  ;;  %v260_v23 = vld [vmem:[#allocation2 + $0x160] sm:$0xff]  ;;  %v262_v24 = vld [vmem:[#allocation2 + $0x170] sm:$0xff]  ;;  %v265_v25 = vld [vmem:[#allocation2 + $0x188] sm:$0xff]  ;;  %s1071_s10 = scalar_lea.vmem %s1171_s0, %s712_s7 }
  0x32   : > { %v267_v26 = vld [vmem:[#allocation2 + $0x198] sm:$0xff]  ;;  %v787_v27 = vpack.c.bf16 %v262_v24, %v260_v23  ;;  %v264_v29 = vld [vmem:[#allocation2 + $0x180] sm:$0xff]  ;;  %v266_v30 = vld [vmem:[#allocation2 + $0x190] sm:$0xff]  ;;  %s207_s27 = scalar_lea.vmem %s1174_s3, %s867_s24 }
  0x33   : > { %v789_v28 = vpack.c.bf16 %v267_v26, %v265_v25  ;;  %v269_v31 = vld [vmem:[#allocation2 + $0x1a8] sm:$0xff]  ;;  %v271_v32 = vld [vmem:[#allocation2 + $0x1b8] sm:$0xff]  ;;  %v791_v33 = vpack.c.bf16 %v266_v30, %v264_v29  ;;  %v268_v35 = vld [vmem:[#allocation2 + $0x1a0] sm:$0xff] }
  0x34   : > { %780 = vmatpush1.bf16.msra.mxu0 %v779_v15  ;;  %v793_v34 = vpack.c.bf16 %v271_v32, %v269_v31  ;;  %v270_v36 = vld [vmem:[#allocation2 + $0x1b0] sm:$0xff]  ;;  %v273_v37 = vld [vmem:[#allocation2 + $0x1c8] sm:$0xff]  ;;  %v275_v38 = vld [vmem:[#allocation2 + $0x1d8] sm:$0xff] }
  0x35   : > { %782 = vmatprep.subr.bf16.mxu0 %v781_v16  ;;  %v795_v39 = vpack.c.bf16 %v270_v36, %v268_v35  ;;  %v797_v40 = vpack.c.bf16 %v275_v38, %v273_v37  ;;  %v272_v41 = vld [vmem:[#allocation2 + $0x1c0] sm:$0xff]  ;;  %v274_v42 = vld [vmem:[#allocation2 + $0x1d0] sm:$0xff]  ;;  %v277_v43 = vld [vmem:[#allocation2 + $0x1e8] sm:$0xff] }
  0x36   : > { %v279_v44 = vld [vmem:[#allocation2 + $0x1f8] sm:$0xff]  ;;  %v491_v45 = vld [vmem:[%s1173_s2] sm:$0xff]  ;;  %v492_v46 = vld [vmem:[%s1173_s2 + $0x8] sm:$0xff]  ;;  %v799_v49 = vpack.c.bf16 %v274_v42, %v272_v41 }
  0x37   : > { %v493_v47 = vld [vmem:[%s1173_s2 + $0x10] sm:$0xff]  ;;  %v494_v48 = vld [vmem:[%s1173_s2 + $0x18] sm:$0xff]  ;;  %v276_v50 = vld [vmem:[#allocation2 + $0x1e0] sm:$0xff]  ;;  %v838_v51 = vpack.c.bf16 %v492_v46, %v491_v45  ;;  %v801_v52 = vpack.c.bf16 %v279_v44, %v277_v43 }
  0x38   : > { %784 = vmatpush1.bf16.msra.mxu0 %v783_v21  ;;  %v278_v53 = vld [vmem:[#allocation2 + $0x1f0] sm:$0xff]  ;;  %v1086_v54 = vld [vmem:[%s1071_s10] sm:$0xff]  ;;  %v1089_v55 = vld [vmem:[%s1071_s10 + $0x8] sm:$0xff]  ;;  %v841_v58 = vpack.c.bf16 %v494_v48, %v493_v47 }
  0x39   : > { %786 = vmatprep.subr.bf16.mxu0 %v785_v22  ;;  %v216_v56 = vld [vmem:[#allocation2 + $0x8] sm:$0xff]  ;;  %v218_v57 = vld [vmem:[#allocation2 + $0x18] sm:$0xff]  ;;  %839 = vmatpush3.bf16.msra.mxu1 %v838_v51  ;;  %v495_v59 = vld [vmem:[%s1173_s2 + $0x20] sm:$0xff]  ;;  %v803_v61 = vpack.c.bf16 %v278_v53, %v276_v50  ;;  %v285_v62 = vrot.slane %v1086_v54, 1  ;;  %v286_v63 = vrot.slane %v1089_v55, 1 }
  0x3a   : > { %840 = vmatprep.subr.bf16.mxu1 %v980_v1  ;;  %v496_v60 = vld [vmem:[%s1173_s2 + $0x28] sm:$0xff]  ;;  %v805_v2 = vpack.c.bf16 %v218_v57, %v216_v56  ;;  %v215_v3 = vld [vmem:[#allocation2] sm:$0xff]  ;;  %v217_v4 = vld [vmem:[#allocation2 + $0x10] sm:$0xff] }
  0x3b   : > { %v1101_v5 = vld [vmem:[%s1071_s10 + $0x10] sm:$0xff]  ;;  %v220_v6 = vld [vmem:[#allocation2 + $0x28] sm:$0xff]  ;;  %v222_v7 = vld [vmem:[#allocation2 + $0x38] sm:$0xff]  ;;  %v844_v8 = vpack.c.bf16 %v496_v60, %v495_v59  ;;  %v287_v9 = vsel %vm284_vm0, %v285_v62, %v286_v63  ;;  %v807_v10 = vpack.c.bf16 %v217_v4, %v215_v3 }
  0x3c   : > { %788 = vmatpush1.bf16.msra.mxu0 %v787_v27  ;;  %v288_v11 = vrot.slane %v1101_v5, 1  ;;  %v809_v12 = vpack.c.bf16 %v222_v7, %v220_v6  ;;  %v219_v13 = vld [vmem:[#allocation2 + $0x20] sm:$0xff]  ;;  %v221_v14 = vld [vmem:[#allocation2 + $0x30] sm:$0xff]  ;;  %v214_v15 = vld [vmem:[%s1071_s10 + $0x18] sm:$0xff] }
  0x3d   : > { %790 = vmatprep.subr.bf16.mxu0 %v789_v28  ;;  %842 = vmatpush3.bf16.msra.mxu1 %v841_v58  ;;  %v224_v16 = vld [vmem:[#allocation2 + $0x48] sm:$0xff]  ;;  %v226_v17 = vld [vmem:[#allocation2 + $0x58] sm:$0xff]  ;;  %v811_v18 = vpack.c.bf16 %v221_v14, %v219_v13  ;;  %v290_v20 = vrot.slane %v214_v15, 1  ;;  %v223_v22 = vld [vmem:[#allocation2 + $0x40] sm:$0xff] }
  0x3e   : > { %843 = vmatprep.subr.bf16.mxu1 %v980_v1  ;;  %v289_v19 = vsel %vm284_vm0, %v286_v63, %v288_v11  ;;  %v813_v21 = vpack.c.bf16 %v226_v17, %v224_v16  ;;  %v225_v23 = vld [vmem:[#allocation2 + $0x50] sm:$0xff]  ;;  %v228_v24 = vld [vmem:[#allocation2 + $0x68] sm:$0xff]  ;;  %v230_v25 = vld [vmem:[#allocation2 + $0x78] sm:$0xff] }
  0x3f   : > { %v815_v26 = vpack.c.bf16 %v225_v23, %v223_v22  ;;  %v291_v27 = vsel %vm284_vm0, %v288_v11, %v290_v20  ;;  %v817_v28 = vpack.c.bf16 %v230_v25, %v228_v24  ;;  %v227_v29 = vld [vmem:[#allocation2 + $0x60] sm:$0xff]  ;;  %v229_v30 = vld [vmem:[#allocation2 + $0x70] sm:$0xff]  ;;  %v232_v31 = vld [vmem:[#allocation2 + $0x88] sm:$0xff] }
  0x40   : > { %792 = vmatpush1.bf16.msra.mxu0 %v791_v33  ;;  %v234_v32 = vld [vmem:[#allocation2 + $0x98] sm:$0xff]  ;;  %v819_v33 = vpack.c.bf16 %v229_v30, %v227_v29  ;;  %v231_v35 = vld [vmem:[#allocation2 + $0x80] sm:$0xff]  ;;  %v233_v36 = vld [vmem:[#allocation2 + $0x90] sm:$0xff] }
  0x41   : > { %794 = vmatprep.subr.bf16.mxu0 %v793_v34  ;;  %845 = vmatpush3.bf16.msra.mxu1 %v844_v8  ;;  %v821_v34 = vpack.c.bf16 %v234_v32, %v232_v31  ;;  %v236_v37 = vld [vmem:[#allocation2 + $0xa8] sm:$0xff]  ;;  %v238_v38 = vld [vmem:[#allocation2 + $0xb8] sm:$0xff]  ;;  %v235_v41 = vld [vmem:[#allocation2 + $0xa0] sm:$0xff] }
  0x42   : > { %846 = vmatprep.subr.bf16.mxu1 %v980_v1  ;;  %v237_v42 = vld [vmem:[#allocation2 + $0xb0] sm:$0xff]  ;;  %v240_v43 = vld [vmem:[#allocation2 + $0xc8] sm:$0xff]  ;;  %v242_v44 = vld [vmem:[#allocation2 + $0xd8] sm:$0xff] }
  0x43   : > { %v827_v45 = vpack.c.bf16 %v237_v42, %v235_v41  ;;  %v829_v46 = vpack.c.bf16 %v242_v44, %v240_v43  ;;  %v239_v47 = vld [vmem:[#allocation2 + $0xc0] sm:$0xff]  ;;  %v241_v48 = vld [vmem:[#allocation2 + $0xd0] sm:$0xff]  ;;  %v246_v50 = vld [vmem:[#allocation2 + $0xf8] sm:$0xff] }
  0x44   : > { %796 = vmatpush1.bf16.msra.mxu0 %v795_v39  ;;  %v823_v39 = vpack.c.bf16 %v233_v36, %v231_v35  ;;  %v831_v51 = vpack.c.bf16 %v241_v48, %v239_v47  ;;  %v243_v53 = vld [vmem:[#allocation2 + $0xe0] sm:$0xff]  ;;  %v245_v56 = vld [vmem:[#allocation2 + $0xf0] sm:$0xff]  ;;  %v498_v59 = vld [vmem:[%s1173_s2 + $0x38] sm:$0xff] }
  0x45   : > { %798 = vmatprep.subr.bf16.mxu0 %v797_v40  ;;  %v825_v40 = vpack.c.bf16 %v238_v38, %v236_v37  ;;  %v835_v57 = vpack.c.bf16 %v245_v56, %v243_v53  ;;  %v497_v58 = vld [vmem:[%s1173_s2 + $0x30] sm:$0xff]  ;;  %v502_v63 = vld [vmem:[%s1173_s2 + $0x58] sm:$0xff]  ;;  %v503_v3 = vld [vmem:[%s1173_s2 + $0x60] sm:$0xff] }
  0x46   : > { %v847_v60 = vpack.c.bf16 %v498_v59, %v497_v58  ;;  %v501_v62 = vld [vmem:[%s1173_s2 + $0x50] sm:$0xff]  ;;  %v504_v4 = vld [vmem:[%s1173_s2 + $0x68] sm:$0xff]  ;;  %v506_v7 = vld [vmem:[%s1173_s2 + $0x78] sm:$0xff] }
  0x47   : > { %v505_v6 = vld [vmem:[%s1173_s2 + $0x70] sm:$0xff] }
  0x48   : > { %800 = vmatpush1.bf16.msra.mxu0 %v799_v49  ;;  %v244_v49 = vld [vmem:[#allocation2 + $0xe8] sm:$0xff]  ;;  %848 = vmatpush3.bf16.msra.mxu1 %v847_v60  ;;  %v859_v8 = vpack.c.bf16 %v506_v7, %v505_v6 }
  0x49   : > { %802 = vmatprep.subr.bf16.mxu0 %v801_v52  ;;  %v833_v52 = vpack.c.bf16 %v246_v50, %v244_v49  ;;  %849 = vmatprep.subr.bf16.mxu1 %v980_v1 }
  0x4c   : > { %804 = vmatpush1.bf16.msra.mxu0 %v803_v61 }
  0x4d   : > { %806 = vmatprep.subr.bf16.mxu0 %v805_v2  ;;  %v853_v2 = vpack.c.bf16 %v502_v63, %v501_v62 }
  0x4f   : > { %360 = vmatmul.mubr.f32.vlgmr.msra.gmra.mrb[0].mxu0 %v287_v9 }
  0x50   : > { %808 = vmatpush1.bf16.msra.mxu0 %v807_v10  ;;  %365 = vmatprep.mubr.f32.mxu0 %v979_v0 }
  0x51   : > { %810 = vmatprep.subr.bf16.mxu0 %v809_v12 }
  0x53   : > { %366 = vmatmul.mubr.f32.gmra.mrb[2].mxu0 %v289_v19 }
  0x54   : > { %812 = vmatpush1.bf16.msra.mxu0 %v811_v18  ;;  %371 = vmatprep.mubr.f32.mxu0 %v979_v0 }
  0x55   : > { %814 = vmatprep.subr.bf16.mxu0 %v813_v21 }
  0x57   : > { %372 = vmatmul.mubr.f32.gmra.mrb[4].mxu0 %v291_v27 }
  0x58   : > { %816 = vmatpush1.bf16.msra.mxu0 %v815_v26  ;;  %442 = vmatprep.mubr.f32.mxu0 %v979_v0 }
  0x59   : > { %818 = vmatprep.subr.bf16.mxu0 %v817_v28 }
  0x5c   : > { %820 = vmatpush1.bf16.msra.mxu0 %v819_v33 }
  0x5d   : > { %822 = vmatprep.subr.bf16.mxu0 %v821_v34 }
  0x60   : > { %824 = vmatpush1.bf16.msra.mxu0 %v823_v39 }
  0x61   : > { %826 = vmatprep.subr.bf16.mxu0 %v825_v40 }
  0x64   : > { %828 = vmatpush1.bf16.msra.mxu0 %v827_v45 }
  0x65   : > { %830 = vmatprep.subr.bf16.mxu0 %v829_v46 }
  0x68   : > { %832 = vmatpush1.bf16.msra.mxu0 %v831_v51 }
  0x69   : > { %834 = vmatprep.subr.bf16.mxu0 %v833_v52 }
  0x6c   : > { %836 = vmatpush1.bf16.msra.mxu0 %v835_v57 }
  0x6f   : > { %443 = vmatmul.mubr.f32.vlgmr.msra.gmra.mrb[0].mxu0 %v1086_v54  ;;  %v499_v54 = vld [vmem:[%s1173_s2 + $0x40] sm:$0xff] }
  0x70   : > { %448 = vmatprep.mubr.f32.mxu0 %v979_v0 }
  0x73   : > { %449 = vmatmul.mubr.f32.gmra.mrb[2].mxu0 %v1089_v55  ;;  %v500_v55 = vld [vmem:[%s1173_s2 + $0x48] sm:$0xff] }
  0x74   : > { %454 = vmatprep.mubr.f32.mxu0 %v979_v0  ;;  %v850_v61 = vpack.c.bf16 %v500_v55, %v499_v54 }
  0x76   : > { %851 = vmatpush3.bf16.msra.mxu1 %v850_v61 }
  0x77   : > { %455 = vmatmul.mubr.f32.gmra.mrb[4].mxu0 %v1101_v5  ;;  %852 = vmatprep.subr.bf16.mxu1 %v980_v1  ;;  %v856_v5 = vpack.c.bf16 %v504_v4, %v503_v3 }
  0x7a   : > { %854 = vmatpush3.bf16.msra.mxu1 %v853_v2 }
  0x7b   : > { %855 = vmatprep.subr.bf16.mxu1 %v980_v1 }
  0x7e   : > { %857 = vmatpush3.bf16.msra.mxu1 %v856_v5 }
  0x7f   : > { %858 = vmatprep.subr.bf16.mxu1 %v980_v1 }
  0x82   : > { %860 = vmatpush3.bf16.msra.mxu1 %v859_v8 }
 0x142   : > { %v444_v9 = vpop.f32.mrb[0].mxu0 }
 0x143   : > { %v461_v10 = vmul.f32 %v444_v9, %v444_v9  ;;  %v446_v11 = vpop.f32.mrb[1].mxu0 }
 0x144   : > { %v464_v12 = vmul.f32 %v446_v11, %v446_v11 }
 0x146   : > { %v467_v13 = vadd.f32 %v464_v12, %v461_v10  ;;  %v450_v14 = vpop.f32.mrb[2].mxu0 }
 0x147   : > { %v462_v15 = vmul.f32 %v450_v14, %v450_v14  ;;  %v452_v16 = vpop.f32.mrb[3].mxu0 }
 0x148   : > { %v465_v17 = vmul.f32 %v452_v16, %v452_v16  ;;  %908 = vrsqrt.f32 %v467_v13  ;;  %vm472_vm2 = vcmp.eq.f32.partialorder %v467_v13, inf  ;;  %v475_v25 = vand.u32 2147483648, %v467_v13 }
 0x149   : > { %vm474_vm3 = vcmp.eq.f32.partialorder %v467_v13, 0.0 }
 0x14a   : > { %v468_v18 = vadd.f32 %v465_v17, %v462_v15  ;;  %v456_v19 = vpop.f32.mrb[4].mxu0 }
 0x14b   : > { %v463_v20 = vmul.f32 %v456_v19, %v456_v19  ;;  %v458_v21 = vpop.f32.mrb[5].mxu0 }
 0x14c   : > { %v466_v22 = vmul.f32 %v458_v21, %v458_v21  ;;  %910 = vrsqrt.f32 %v468_v18  ;;  %vm479_vm4 = vcmp.eq.f32.partialorder %v468_v18, inf  ;;  %v482_v30 = vand.u32 2147483648, %v468_v18 }
 0x14d   : > { %vm481_vm5 = vcmp.eq.f32.partialorder %v468_v18, 0.0 }
 0x14e   : > { %v469_v23 = vadd.f32 %v466_v22, %v463_v20 }
 0x150   : > { %912 = vrsqrt.f32 %v469_v23  ;;  %vm486_vm6 = vcmp.eq.f32.partialorder %v469_v23, inf  ;;  %v489_v35 = vand.u32 2147483648, %v469_v23  ;;  %vm488_vm7 = vcmp.eq.f32.partialorder %v469_v23, 0.0 }
 0x152   : > { %v909_v1 = vpop.eup %908 }
 0x153   : > { %v471_v24 = vmul.f32 %v909_v1, %v467_v13 }
 0x155   : > { %v473_v26 = vsel %vm472_vm2, %v467_v13, %v471_v24 }
 0x156   : > { %v911_v27 = vpop.eup %910  ;;  %v476_v28 = vsel %vm474_vm3, %v475_v25, %v473_v26 }
 0x157   : > { %765 = vmatmul.mubr.f32.vlgmr.msra.gmra.mrb[0].mxu1 %v476_v28  ;;  %v478_v29 = vmul.f32 %v911_v27, %v468_v18 }
 0x158   : > { %767 = vmatprep.mubr.msk.f32.mxu1 %vm981_vm1, %v979_v0 }
 0x159   : > { %v480_v31 = vsel %vm479_vm4, %v468_v18, %v478_v29 }
 0x15a   : > { %v913_v32 = vpop.eup %912  ;;  %v483_v33 = vsel %vm481_vm5, %v482_v30, %v480_v31 }
 0x15b   : > { %768 = vmatmul.mubr.f32.gmra.mrb[2].mxu1 %v483_v33  ;;  %v485_v34 = vmul.f32 %v913_v32, %v469_v23 }
 0x15c   : > { %770 = vmatprep.mubr.msk.f32.mxu1 %vm981_vm1, %v979_v0 }
 0x15d   : > { %v487_v36 = vsel %vm486_vm6, %v469_v23, %v485_v34 }
 0x15e   : > { %v490_v37 = vsel %vm488_vm7, %v489_v35, %v487_v36 }
 0x15f   : > { %771 = vmatmul.mubr.f32.gmra.mrb[4].mxu1 %v490_v37 }
 0x22a   : > { %v573_v38 = vpop.f32.mrb[0].mxu1 }
 0x22b   : > { %v587_v39 = vmul.f32 %v573_v38, %v573_v38  ;;  %v766_v40 = vpop.f32.mrb[1].mxu1 }
 0x22d   : > { %v590_v41 = vadd.f32 1e-08, %v587_v39 }
 0x22e   : > { %v578_v42 = vpop.f32.mrb[2].mxu1 }
 0x22f   : > { %914 = vlog2.f32 %v590_v41  ;;  %v588_v43 = vmul.f32 %v578_v42, %v578_v42  ;;  %v769_v44 = vpop.f32.mrb[3].mxu1 }
 0x231   : > { %v591_v45 = vadd.f32 1e-08, %v588_v43 }
 0x232   : > { %v583_v46 = vpop.f32.mrb[4].mxu1 }
 0x233   : > { %916 = vlog2.f32 %v591_v45  ;;  %v589_v47 = vmul.f32 %v583_v46, %v583_v46  ;;  %v772_v0 = vpop.f32.mrb[5].mxu1 }
 0x235   : > { %v592_v48 = vadd.f32 1e-08, %v589_v47 }
 0x237   : > { %918 = vlog2.f32 %v592_v48 }
 0x239   : > { %v915_v49 = vpop.eup %914 }
 0x23a   : > { %v594_v50 = vmul.f32 0.6931472, %v915_v49 }
 0x23c   : > { %v599_v51 = vmul.f32 4.3429446, %v594_v50 }
 0x23d   : > { %v917_v52 = vpop.eup %916 }
 0x23e   : > { %602 = vst [vmem:[%s207_s27] sm:$0xff] %v599_v51  ;;  %v596_v53 = vmul.f32 0.6931472, %v917_v52 }
 0x240   : > { %v600_v56 = vmul.f32 4.3429446, %v596_v53 }
 0x241   : > { %v919_v57 = vpop.eup %918 }
 0x242   : > { %603 = vst [vmem:[%s207_s27 + $0x8] sm:$0xff] %v600_v56  ;;  %v598_v58 = vmul.f32 0.6931472, %v919_v57 }
 0x244   : > { %v601_v59 = vmul.f32 4.3429446, %v598_v58 }
 0x246   : > { %604 = vst [vmem:[%s207_s27 + $0x10] sm:$0xff] %v601_v59 }
 0x247 PF: > { %s14_s14 = sadd.s32 1, %s974_s14   ;;  %s1183_s12 = smov %s970_s13 }
 0x248   : > { %p11_p4 = scmp.ge.s32.totalorder %s14_s14, 4   ;;  %s1184_s13 = smov %s1186_s16 }
 0x24a   :  { %13 = sbr.rel (!%p11_p4) target bundleno = 2 (0x2), region = 69 }
 0x251   :  { %635 = vsyncpa [#allocation3], 1 }
 0x252   :  { %637 = vsyncpa [#allocation3 + $0x1], 1 }

</bundles_post_ra>
